<compile_context>
chip_gen: v7x
topology: tpu7x:2x2x1
jax: 0.10.0
libtpu: 0.0.40
codegen_flags: <defaults>
</compile_context>

<pallas_src>
import jax
import jax.numpy as jnp
from jax.experimental import pallas as pl
from jax.experimental.pallas import tpu as pltpu

D_IN, HID, N_CLS = 28 * 28, 100, 10   # logical sizes
HP = 128                               # hidden width padded to one lane tile
CP = 32                                # classifier width padded (was 128) -> 4x less writeback


# ----------------------------- Pallas kernel --------------------------------
def _mlp_kernel(x_ref, w1_ref, b1_ref, w2_ref, b2_ref, w3_ref, b3_ref,
                wc_ref, bc_ref, o_ref):
    # bf16 operands on the MXU, f32 accumulation; biases added in f32.
    # astype is a no-op if the caller already supplies bf16 x.
    h = jnp.dot(x_ref[...].astype(jnp.bfloat16), w1_ref[...],
                preferred_element_type=jnp.float32)
    h = jnp.maximum(h + b1_ref[...], 0.0)            # ReLU (dropout == identity)
    h = jnp.dot(h.astype(jnp.bfloat16), w2_ref[...],
                preferred_element_type=jnp.float32)
    h = jnp.maximum(h + b2_ref[...], 0.0)
    h = jnp.dot(h.astype(jnp.bfloat16), w3_ref[...],
                preferred_element_type=jnp.float32)
    h = jnp.maximum(h + b3_ref[...], 0.0)
    out = jnp.dot(h.astype(jnp.bfloat16), wc_ref[...],
                  preferred_element_type=jnp.float32)
    o_ref[...] = (out + bc_ref[...]).astype(o_ref.dtype)


# ------------------------------ helpers --------------------------------------
def _round_up(n, m):
    return ((n + m - 1) // m) * m


def _pad_to(a, target_shape):
    return jnp.pad(a, [(0, t - s) for s, t in zip(a.shape, target_shape)])


def _pick_tile(B):
    """Batch tile: single full tile for small B (latency), else <=~1024-row tiles
    with >=4 grid steps so v7x megacore shards each keep >=2 pipelined steps."""
    if B <= 128:
        return B                      # block == full array dim is always legal
    steps = max(4, pl.cdiv(B, 1024))  # tiles of at most ~1024 rows
    return _round_up(pl.cdiv(B, steps), 8)


def prepare_params(params):
    """One-time prep: pad output dims (HP=128, CP=32), cast weights to bf16.

    Zero padding is semantics-preserving: padded features get zero weight and zero
    bias, ReLU(0) = 0, and padded logit columns are sliced off.
    """
    prep = {
        "w1": _pad_to(params["w1"], (D_IN, HP)).astype(jnp.bfloat16),
        "w2": _pad_to(params["w2"], (HP, HP)).astype(jnp.bfloat16),
        "w3": _pad_to(params["w3"], (HP, HP)).astype(jnp.bfloat16),
        "wc": _pad_to(params["wc"], (HP, CP)).astype(jnp.bfloat16),
        "b1": _pad_to(params["b1"].reshape(1, -1), (1, HP)).astype(jnp.float32),
        "b2": _pad_to(params["b2"].reshape(1, -1), (1, HP)).astype(jnp.float32),
        "b3": _pad_to(params["b3"].reshape(1, -1), (1, HP)).astype(jnp.float32),
        "bc": _pad_to(params["bc"].reshape(1, -1), (1, CP)).astype(jnp.float32),
    }
    return jax.tree_util.tree_map(jax.block_until_ready, prep)


# ------------------------------- forward -------------------------------------
@jax.jit
def simple_nn_forward(x, prep):
    """x: (B, 1, 28, 28) or (B, 784), f32 or bf16. Returns (B, 10) f32 logits."""
    B = x.shape[0]
    x2 = x.reshape(B, -1)                              # x.view(B, -1)
    if x2.dtype not in (jnp.float32, jnp.bfloat16):
        x2 = x2.astype(jnp.float32)                    # x.to(layer1.weight.dtype)

    TB = _pick_tile(B)
    grid = (pl.cdiv(B, TB),)                           # ragged last block is OK

    # Advisory cost hint for XLA's scheduler around the custom call.
    flops = 2 * B * (D_IN * HP + 2 * HP * HP + HP * CP)
    bytes_accessed = (B * (D_IN * x2.dtype.itemsize + CP * 4)      # x read + logits write
                      + (D_IN * HP + 2 * HP * HP + HP * CP) * 2    # bf16 weights
                      + (3 * HP + CP) * 4)                         # f32 biases

    const = lambda shape: pl.BlockSpec(shape, lambda i: (0, 0))    # resident weights

    out_p = pl.pallas_call(
        _mlp_kernel,
        out_shape=jax.ShapeDtypeStruct((B, CP), jnp.float32),
        grid=grid,
        in_specs=[
            pl.BlockSpec((TB, D_IN), lambda i: (i, 0)),            # x tiles stream
            const((D_IN, HP)), const((1, HP)),                     # layer1
            const((HP, HP)),   const((1, HP)),                     # layer2
            const((HP, HP)),   const((1, HP)),                     # layer3
            const((HP, CP)),   const((1, CP)),                     # classifier
        ],
        out_specs=pl.BlockSpec((TB, CP), lambda i: (i, 0)),
        compiler_params=pltpu.CompilerParams(
            dimension_semantics=("parallel",)),
        cost_estimate=pl.CostEstimate(flops=flops, transcendentals=0,
                                      bytes_accessed=bytes_accessed),
    )(x2, prep["w1"], prep["b1"], prep["w2"], prep["b2"],
      prep["w3"], prep["b3"], prep["wc"], prep["bc"])

    return out_p[:, :N_CLS]


# ------------------------- deterministic parameter init ---------------------
def init_params(key):
    """Matches nn.Linear default init: U(-1/sqrt(fan_in), 1/sqrt(fan_in))."""
    def linear(key, fan_in, fan_out):
        kw, kb = jax.random.split(key)
        bound = 1.0 / jnp.sqrt(fan_in)
        # Stored as (in, out): kernel computes x @ W, i.e. PyTorch x @ W.T.
        w = jax.random.uniform(kw, (fan_in, fan_out), jnp.float32, -bound, bound)
        b = jax.random.uniform(kb, (fan_out,), jnp.float32, -bound, bound)
        return w, b

    k1, k2, k3, kc = jax.random.split(key, 4)
    w1, b1 = linear(k1, D_IN, HID)
    w2, b2 = linear(k2, HID, HID)
    w3, b3 = linear(k3, HID, HID)
    wc, bc = linear(kc, HID, N_CLS)
    return {"w1": w1, "b1": b1, "w2": w2, "b2": b2,
            "w3": w3, "b3": b3, "wc": wc, "bc": bc}


# ------------------------------- reference ----------------------------------
def reference_forward(x, p):
    h = x.reshape(x.shape[0], -1).astype(jnp.float32)
    h = jnp.maximum(h @ p["w1"] + p["b1"], 0.0)
    h = jnp.maximum(h @ p["w2"] + p["b2"], 0.0)
    h = jnp.maximum(h @ p["w3"] + p["b3"], 0.0)
    return h @ p["wc"] + p["bc"]


if __name__ == "__main__":
    key = jax.random.PRNGKey(0)
    k_x, k_x2, k_x3, k_p = jax.random.split(key, 4)

    params = init_params(k_p)
    prep = prepare_params(params)   # one-time pad + bf16 cast (outside the hot path)

    # Latency-style batch: MNIST NCHW (2, 1, 28, 28) -> single full-array tile.
    x_small = jax.random.normal(k_x, (2, 1, 28, 28), jnp.float32)
    out_small = jax.block_until_ready(simple_nn_forward(x_small, prep))
    ref_small = reference_forward(x_small, params)
    assert out_small.shape == (2, 10), out_small.shape
    assert jnp.allclose(out_small, ref_small, atol=5e-2, rtol=5e-2), \
        f"small-batch max abs err {jnp.max(jnp.abs(out_small - ref_small))}"

    # Throughput-style batch: 512 rows -> 4 streamed tiles of 128.
    x_big = jax.random.normal(k_x2, (512, 1, 28, 28), jnp.float32)
    out_big = jax.block_until_ready(simple_nn_forward(x_big, prep))
    ref_big = reference_forward(x_big, params)
    assert out_big.shape == (512, 10), out_big.shape
    assert jnp.allclose(out_big, ref_big, atol=5e-2, rtol=5e-2), \
        f"big-batch max abs err {jnp.max(jnp.abs(out_big - ref_big))}"

    # Ragged batch: 300 rows -> 4 tiles of 80 with a masked partial last block
    # (exercises the no-pad grid path).
    x_rag = jax.random.normal(k_x3, (300, 1, 28, 28), jnp.float32)
    out_rag = jax.block_until_ready(simple_nn_forward(x_rag, prep))
    ref_rag = reference_forward(x_rag, params)
    assert out_rag.shape == (300, 10), out_rag.shape
    assert jnp.allclose(out_rag, ref_rag, atol=5e-2, rtol=5e-2), \
        f"ragged-batch max abs err {jnp.max(jnp.abs(out_rag - ref_rag))}"

    # bf16 input contract (halves the dominant HBM stream); looser tolerance.
    out_bf16 = jax.block_until_ready(simple_nn_forward(x_big.astype(jnp.bfloat16), prep))
    assert jnp.allclose(out_bf16, ref_big, atol=1e-1, rtol=1e-1), \
        f"bf16-input max abs err {jnp.max(jnp.abs(out_bf16 - ref_big))}"

    print("KERNEL_OK")
</pallas_src>

<mosaic_0001>
module attributes {stable_mosaic.version = 11 : i64} {
  func.func @_mlp_kernel(%arg0: i32, %arg1: memref<2x784xf32, #tpu.memory_space<vmem>>, %arg2: memref<784x128xbf16, #tpu.memory_space<vmem>>, %arg3: memref<1x128xf32, #tpu.memory_space<vmem>>, %arg4: memref<128x128xbf16, #tpu.memory_space<vmem>>, %arg5: memref<1x128xf32, #tpu.memory_space<vmem>>, %arg6: memref<128x128xbf16, #tpu.memory_space<vmem>>, %arg7: memref<1x128xf32, #tpu.memory_space<vmem>>, %arg8: memref<128x32xbf16, #tpu.memory_space<vmem>>, %arg9: memref<1x32xf32, #tpu.memory_space<vmem>>, %arg10: memref<2x32xf32, #tpu.memory_space<vmem>>) attributes {dimension_semantics = [#tpu.dimension_semantics<parallel>], iteration_bounds = array<i64: 1>, scalar_prefetch = 0 : i64, scratch_operands = 0 : i64, tpu.core_type = #tpu.core_type<tc>, window_params = [{transform_indices = @transform_0, window_bounds = array<i64: 2, 784>}, {pipeline_mode = #tpu.pipeline_mode<synchronous>, transform_indices = @transform_1, window_bounds = array<i64: 784, 128>}, {pipeline_mode = #tpu.pipeline_mode<synchronous>, transform_indices = @transform_2, window_bounds = array<i64: 1, 128>}, {pipeline_mode = #tpu.pipeline_mode<synchronous>, transform_indices = @transform_3, window_bounds = array<i64: 128, 128>}, {pipeline_mode = #tpu.pipeline_mode<synchronous>, transform_indices = @transform_4, window_bounds = array<i64: 1, 128>}, {pipeline_mode = #tpu.pipeline_mode<synchronous>, transform_indices = @transform_5, window_bounds = array<i64: 128, 128>}, {pipeline_mode = #tpu.pipeline_mode<synchronous>, transform_indices = @transform_6, window_bounds = array<i64: 1, 128>}, {pipeline_mode = #tpu.pipeline_mode<synchronous>, transform_indices = @transform_7, window_bounds = array<i64: 128, 32>}, {pipeline_mode = #tpu.pipeline_mode<synchronous>, transform_indices = @transform_8, window_bounds = array<i64: 1, 32>}, {transform_indices = @transform_9, window_bounds = array<i64: 2, 32>}]} {
    %c0 = arith.constant 0 : index
    %c0_0 = arith.constant 0 : index
    %0 = vector.load %arg1[%c0, %c0_0] : memref<2x784xf32, #tpu.memory_space<vmem>>, vector<2x784xf32>
    %1 = arith.truncf %0 : vector<2x784xf32> to vector<2x784xbf16>
    %c0_1 = arith.constant 0 : index
    %c0_2 = arith.constant 0 : index
    %2 = vector.load %arg2[%c0_1, %c0_2] : memref<784x128xbf16, #tpu.memory_space<vmem>>, vector<784x128xbf16>
    %cst = arith.constant dense<0.000000e+00> : vector<2x128xf32>
    %3 = tpu.matmul %1, %2, %cst {dimension_numbers = #tpu.dot_dimension_numbers<[1], [0], [0], [1], [0, 0, 1, 1], [], []>} : vector<2x784xbf16>, vector<784x128xbf16>, vector<2x128xf32> -> vector<2x128xf32>
    %c0_3 = arith.constant 0 : index
    %c0_4 = arith.constant 0 : index
    %4 = vector.load %arg3[%c0_3, %c0_4] : memref<1x128xf32, #tpu.memory_space<vmem>>, vector<1x128xf32>
    %5 = vector.broadcast %4 : vector<1x128xf32> to vector<2x128xf32>
    %6 = arith.addf %3, %5 : vector<2x128xf32>
    %cst_5 = arith.constant 0.000000e+00 : f32
    %7 = vector.broadcast %cst_5 : f32 to vector<2x128xf32>
    %8 = arith.maximumf %6, %7 : vector<2x128xf32>
    %9 = arith.truncf %8 : vector<2x128xf32> to vector<2x128xbf16>
    %c0_6 = arith.constant 0 : index
    %c0_7 = arith.constant 0 : index
    %10 = vector.load %arg4[%c0_6, %c0_7] : memref<128x128xbf16, #tpu.memory_space<vmem>>, vector<128x128xbf16>
    %cst_8 = arith.constant dense<0.000000e+00> : vector<2x128xf32>
    %11 = tpu.matmul %9, %10, %cst_8 {dimension_numbers = #tpu.dot_dimension_numbers<[1], [0], [0], [1], [0, 0, 1, 1], [], []>} : vector<2x128xbf16>, vector<128x128xbf16>, vector<2x128xf32> -> vector<2x128xf32>
    %c0_9 = arith.constant 0 : index
    %c0_10 = arith.constant 0 : index
    %12 = vector.load %arg5[%c0_9, %c0_10] : memref<1x128xf32, #tpu.memory_space<vmem>>, vector<1x128xf32>
    %13 = vector.broadcast %12 : vector<1x128xf32> to vector<2x128xf32>
    %14 = arith.addf %11, %13 : vector<2x128xf32>
    %cst_11 = arith.constant 0.000000e+00 : f32
    %15 = vector.broadcast %cst_11 : f32 to vector<2x128xf32>
    %16 = arith.maximumf %14, %15 : vector<2x128xf32>
    %17 = arith.truncf %16 : vector<2x128xf32> to vector<2x128xbf16>
    %c0_12 = arith.constant 0 : index
    %c0_13 = arith.constant 0 : index
    %18 = vector.load %arg6[%c0_12, %c0_13] : memref<128x128xbf16, #tpu.memory_space<vmem>>, vector<128x128xbf16>
    %cst_14 = arith.constant dense<0.000000e+00> : vector<2x128xf32>
    %19 = tpu.matmul %17, %18, %cst_14 {dimension_numbers = #tpu.dot_dimension_numbers<[1], [0], [0], [1], [0, 0, 1, 1], [], []>} : vector<2x128xbf16>, vector<128x128xbf16>, vector<2x128xf32> -> vector<2x128xf32>
    %c0_15 = arith.constant 0 : index
    %c0_16 = arith.constant 0 : index
    %20 = vector.load %arg7[%c0_15, %c0_16] : memref<1x128xf32, #tpu.memory_space<vmem>>, vector<1x128xf32>
    %21 = vector.broadcast %20 : vector<1x128xf32> to vector<2x128xf32>
    %22 = arith.addf %19, %21 : vector<2x128xf32>
    %cst_17 = arith.constant 0.000000e+00 : f32
    %23 = vector.broadcast %cst_17 : f32 to vector<2x128xf32>
    %24 = arith.maximumf %22, %23 : vector<2x128xf32>
    %25 = arith.truncf %24 : vector<2x128xf32> to vector<2x128xbf16>
    %c0_18 = arith.constant 0 : index
    %c0_19 = arith.constant 0 : index
    %26 = vector.load %arg8[%c0_18, %c0_19] : memref<128x32xbf16, #tpu.memory_space<vmem>>, vector<128x32xbf16>
    %cst_20 = arith.constant dense<0.000000e+00> : vector<2x32xf32>
    %27 = tpu.matmul %25, %26, %cst_20 {dimension_numbers = #tpu.dot_dimension_numbers<[1], [0], [0], [1], [0, 0, 1, 1], [], []>} : vector<2x128xbf16>, vector<128x32xbf16>, vector<2x32xf32> -> vector<2x32xf32>
    %c0_21 = arith.constant 0 : index
    %c0_22 = arith.constant 0 : index
    %28 = vector.load %arg9[%c0_21, %c0_22] : memref<1x32xf32, #tpu.memory_space<vmem>>, vector<1x32xf32>
    %29 = vector.broadcast %28 : vector<1x32xf32> to vector<2x32xf32>
    %30 = arith.addf %27, %29 : vector<2x32xf32>
    %c0_23 = arith.constant 0 : index
    %c0_24 = arith.constant 0 : index
    %31 = vector.load %arg10[%c0_23, %c0_24] : memref<2x32xf32, #tpu.memory_space<vmem>>, vector<2x32xf32>
    tpu.vector_store %arg10[%c0_23, %c0_24], %30 {strides = array<i32>} : memref<2x32xf32, #tpu.memory_space<vmem>>, vector<2x32xf32>,
    return
  }
  func.func @transform_0(%arg0: i32) -> (i32, i32) {
    %c0_i32 = arith.constant 0 : i32
    %c0_i32_0 = arith.constant 0 : i32
    return %arg0, %c0_i32 : i32, i32
  }
  func.func @transform_1(%arg0: i32) -> (i32, i32) {
    %c0_i32 = arith.constant 0 : i32
    %c0_i32_0 = arith.constant 0 : i32
    %c0_i32_1 = arith.constant 0 : i32
    return %c0_i32, %c0_i32_0 : i32, i32
  }
  func.func @transform_2(%arg0: i32) -> (i32, i32) {
    %c0_i32 = arith.constant 0 : i32
    %c0_i32_0 = arith.constant 0 : i32
    %c0_i32_1 = arith.constant 0 : i32
    return %c0_i32, %c0_i32_0 : i32, i32
  }
  func.func @transform_3(%arg0: i32) -> (i32, i32) {
    %c0_i32 = arith.constant 0 : i32
    %c0_i32_0 = arith.constant 0 : i32
    %c0_i32_1 = arith.constant 0 : i32
    return %c0_i32, %c0_i32_0 : i32, i32
  }
  func.func @transform_4(%arg0: i32) -> (i32, i32) {
    %c0_i32 = arith.constant 0 : i32
    %c0_i32_0 = arith.constant 0 : i32
    %c0_i32_1 = arith.constant 0 : i32
    return %c0_i32, %c0_i32_0 : i32, i32
  }
  func.func @transform_5(%arg0: i32) -> (i32, i32) {
    %c0_i32 = arith.constant 0 : i32
    %c0_i32_0 = arith.constant 0 : i32
    %c0_i32_1 = arith.constant 0 : i32
    return %c0_i32, %c0_i32_0 : i32, i32
  }
  func.func @transform_6(%arg0: i32) -> (i32, i32) {
    %c0_i32 = arith.constant 0 : i32
    %c0_i32_0 = arith.constant 0 : i32
    %c0_i32_1 = arith.constant 0 : i32
    return %c0_i32, %c0_i32_0 : i32, i32
  }
  func.func @transform_7(%arg0: i32) -> (i32, i32) {
    %c0_i32 = arith.constant 0 : i32
    %c0_i32_0 = arith.constant 0 : i32
    %c0_i32_1 = arith.constant 0 : i32
    return %c0_i32, %c0_i32_0 : i32, i32
  }
  func.func @transform_8(%arg0: i32) -> (i32, i32) {
    %c0_i32 = arith.constant 0 : i32
    %c0_i32_0 = arith.constant 0 : i32
    %c0_i32_1 = arith.constant 0 : i32
    return %c0_i32, %c0_i32_0 : i32, i32
  }
  func.func @transform_9(%arg0: i32) -> (i32, i32) {
    %c0_i32 = arith.constant 0 : i32
    %c0_i32_0 = arith.constant 0 : i32
    return %arg0, %c0_i32 : i32, i32
  }
}

</mosaic_0001>

<bundles_post_ra>
// kernel: simple_nn_forward.1
= control target key start
LH: loop header
LB: loop body
LE: loop exit
PB: predicated region body
PF: predicated region fallthrough
CT: control target
= control target key end

     0   :  { %14 = vsyncpa [#allocation3], 0  ;;  %s1592_s0 = inlined_call_operand.vmem [shape: f32[2,784], index: 0, kind: input, shape index: {}]   ;;  %s1593_s1 = inlined_call_operand.hbm [shape: bf16[784,128], index: 1, kind: input, shape index: {}]   ;;  %s1594_s2 = inlined_call_operand.vmem [shape: f32[1,128], index: 2, kind: input, shape index: {}]   ;;  %s1595_s3 = inlined_call_operand.vmem [shape: bf16[128,128], index: 3, kind: input, shape index: {}]   ;;  %s1596_s4 = inlined_call_operand.vmem [shape: f32[1,128], index: 4, kind: input, shape index: {}]   ;;  %s1597_s5 = inlined_call_operand.vmem [shape: bf16[128,128], index: 5, kind: input, shape index: {}]   ;;  %s1598_s6 = inlined_call_operand.vmem [shape: f32[1,128], index: 6, kind: input, shape index: {}]   ;;  %s1599_s7 = inlined_call_operand.vmem [shape: bf16[128,32], index: 7, kind: input, shape index: {}]   ;;  %s1600_s8 = inlined_call_operand.vmem [shape: f32[1,32], index: 8, kind: input, shape index: {}]   ;;  %s1601_s9 = inlined_call_operand.hbm [shape: f32[2,32], index: 9, kind: output, shape index: {}]  }
   0x1   :  { %15 = vsyncpa [#allocation4], 0  ;;  %s1387_s30 = smov [#allocation2]   ;;  %s1339_s13 = scalar_lea.hbm %s1593_s1, 6272 }
   0x2   :  { %s23_s10 = sshll.u32 %s1387_s30, 4  ;;  %p1340_p0 = scmp.ne.s32.totalorder %s1593_s1, %s1339_s13  ;;  %s24_s10 = int_to_ptr.vmem [resolvable:$true] %s23_s10 }
   0x3   :  { %p1343_p1 = scmp.lt.u32.totalorder %s1339_s13, %s1593_s1 }
   0x5   :  { %p1345_p2 = pnand %p1343_p1, %p1340_p0 }
   0x7   :  { %1348 = shalt.err (!%p1345_p2)
}
   0x8   :  { %s1349_s18 = scalar_lea.vmem %s24_s10, 6272  ;;  %p1354_p4 = scmp.lt.s32.totalorder %s24_s10, %s24_s10 }
   0x9   :  { %p1350_p3 = scmp.ne.s32.totalorder %s24_s10, %s1349_s18  ;;  %p1355_p5 = scmp.lt.s32.totalorder %s1349_s18, %s1349_s18 }
   0xb   :  { %p1356_p6 = por %p1355_p5, %p1354_p4 }
   0xd   :  { %p1357_p7 = pnand %p1356_p6, %p1350_p3 }
   0xf   :  { %1360 = shalt.err (!%p1357_p7)
}
  0x10   :  { %s1388_s19 = smov 64   ;;  %s1389_s20 = smov 4  }
  0x11   :  { %29 = dma.hbm_to_vmem [thread:$0]  %s1593_s1, 6272, %s24_s10, [#allocation3], %s1388_s19, %s1388_s19, %s1389_s20  }
  0x12   :  { %1383 = dma.done.wait [#allocation3], 6272  }
  0x13   :  { %1384 = vsyncadd [#allocation3], 4294961024  ;;  %v1264_v0 = vld [vmem:[#allocation2 + $0x40] sm:$0xff]   ;;  %v1268_v4 = vld [vmem:[#allocation2 + $0x48] sm:$0xff]   ;;  %v1390_v21 = vmov 1983009808   ;;  %v56_v23 = vlaneseq }
  0x14   :  { %v1265_v1 = vld [vmem:[#allocation2] sm:$0xff]   ;;  %1096 = vmatprep.subr.bf16.mxu0 %v1264_v0  ;;  %v1269_v5 = vld [vmem:[#allocation2 + $0x8] sm:$0xff]   ;;  %v1272_v8 = vld [vmem:[#allocation2 + $0x50] sm:$0xff]   ;;  %v54_v22 = vunpack.c.l.s4 %v1390_v21  ;;  %v1391_v45 = vmov 0.0   ;;  %vm1392_vm0 = vmmov 0   ;;  %vm498_vm1 = vcmask 130048  }
  0x15   :  { %v1266_v2 = vld [vmem:[#allocation2 + $0xc0] sm:$0xff]   ;;  %1097 = vmatpush3.bf16.msra.mxu0 %v1265_v1  ;;  %v1270_v6 = vld [vmem:[#allocation2 + $0xc8] sm:$0xff]   ;;  %v1273_v9 = vld [vmem:[#allocation2 + $0x10] sm:$0xff]   ;;  %v57_v29 = vshrl.u32 %v56_v23, 7  ;;  %s1393_s30 = smov [#allocation5]   ;;  %vm1001_vm2 = vcmask 254976  }
  0x16   :  { %v1267_v3 = vld [vmem:[#allocation2 + $0x80] sm:$0xff]   ;;  %1118 = vmatprep.subr.bf16.mxu1 %v1266_v2  ;;  %1098 = vmatprep.subr.bf16.mxu0 %v1268_v4  ;;  %v1271_v7 = vld [vmem:[#allocation2 + $0x88] sm:$0xff]   ;;  %v1274_v10 = vld [vmem:[#allocation2 + $0xd0] sm:$0xff]   ;;  %v55_v28 = vunpack.c.0.s8 %v54_v22 }
  0x17   :  { %1119 = vmatpush3.bf16.msra.mxu1 %v1267_v3  ;;  %v1275_v11 = vld [vmem:[#allocation2 + $0x90] sm:$0xff]   ;;  %v1276_v12 = vld [vmem:[#allocation2 + $0x58] sm:$0xff]   ;;  %v1280_v16 = vld [vmem:[#allocation2 + $0x60] sm:$0xff]  }
  0x18   :  { %1120 = vmatprep.subr.bf16.mxu1 %v1270_v6  ;;  %v1277_v13 = vld [vmem:[#allocation2 + $0x18] sm:$0xff]   ;;  %v1281_v17 = vld [vmem:[#allocation2 + $0x20] sm:$0xff]   ;;  %v1284_v20 = vld [vmem:[#allocation2 + $0x68] sm:$0xff]   ;;  %v58_v34 = vsub.s32 %v55_v28, %v57_v29 }
  0x19   :  { %1099 = vmatpush3.bf16.msra.mxu0 %v1269_v5  ;;  %v1278_v14 = vld [vmem:[#allocation2 + $0xd8] sm:$0xff]   ;;  %v1282_v18 = vld [vmem:[#allocation2 + $0xe0] sm:$0xff]   ;;  %v1285_v24 = vld [vmem:[#allocation2 + $0x28] sm:$0xff]  }
  0x1a   :  { %1100 = vmatprep.subr.bf16.mxu0 %v1272_v8  ;;  %v1279_v15 = vld [vmem:[#allocation2 + $0x98] sm:$0xff]   ;;  %v1283_v19 = vld [vmem:[#allocation2 + $0xa0] sm:$0xff]   ;;  %v1286_v25 = vld [vmem:[#allocation2 + $0xe8] sm:$0xff]  }
  0x1b   :  { %1121 = vmatpush3.bf16.msra.mxu1 %v1271_v7  ;;  %v1287_v26 = vld [vmem:[#allocation2 + $0xa8] sm:$0xff]   ;;  %v1288_v27 = vld [vmem:[#allocation2 + $0x70] sm:$0xff]   ;;  %v1292_v33 = vld [vmem:[#allocation2 + $0x78] sm:$0xff]  }
  0x1c   :  { %1122 = vmatprep.subr.bf16.mxu1 %v1274_v10  ;;  %v1289_v30 = vld [vmem:[#allocation2 + $0x30] sm:$0xff]   ;;  %v1293_v35 = vld [vmem:[#allocation2 + $0x38] sm:$0xff]   ;;  %v48_v37 = vld [vmem:[%s1592_s0] sm:$0xff] }
  0x1d   :  { %1101 = vmatpush3.bf16.msra.mxu0 %v1273_v9  ;;  %v1290_v31 = vld [vmem:[#allocation2 + $0xf0] sm:$0xff]   ;;  %v1294_v36 = vld [vmem:[#allocation2 + $0xf8] sm:$0xff]   ;;  %v59_v38 = vrot.slane %v48_v37, %v58_v34  ;;  %v52_v40 = vcombine.high %v48_v37, %v48_v37  ;;  %v1296_v41 = vld [vmem:[#allocation2 + $0x140] sm:$0xff]  }
  0x1e   :  { %1102 = vmatprep.subr.bf16.mxu0 %v1276_v12  ;;  %v1291_v32 = vld [vmem:[#allocation2 + $0xb0] sm:$0xff]   ;;  %v1295_v39 = vld [vmem:[#allocation2 + $0xb8] sm:$0xff]   ;;  %v1298_v48 = vld [vmem:[#allocation2 + $0x100] sm:$0xff]  }
  0x1f   :  { %1123 = vmatpush3.bf16.msra.mxu1 %v1275_v11  ;;  %v67_v42 = vcombine.high %v59_v38, %v59_v38  ;;  %v66_v43 = vrot.slane %v52_v40, %v58_v34  ;;  %v92_v44 = vpack.c.bf16 %v59_v38, %v59_v38  ;;  %v1299_v50 = vld [vmem:[#allocation2 + $0x148] sm:$0xff]   ;;  %v1301_v53 = vld [vmem:[#allocation2 + $0x150] sm:$0xff]   ;;  %v1303_v55 = vld [vmem:[#allocation2 + $0x158] sm:$0xff]  }
  0x20   :  { %1124 = vmatprep.subr.bf16.mxu1 %v1278_v14  ;;  %v1300_v52 = vld [vmem:[#allocation2 + $0x108] sm:$0xff]   ;;  %v1302_v54 = vld [vmem:[#allocation2 + $0x110] sm:$0xff]   ;;  %v1304_v56 = vld [vmem:[#allocation2 + $0x118] sm:$0xff]  }
  0x21   :  { %1103 = vmatpush3.bf16.msra.mxu0 %v1277_v13  ;;  %v93_v46 = vpack.c.bf16 %v67_v42, %v67_v42  ;;  %v68_v47 = vcombine.high %v66_v43, %v66_v43  ;;  %v94_v49 = vpack.c.bf16 %v66_v43, %v66_v43  ;;  %v1305_v57 = vld [vmem:[#allocation2 + $0x160] sm:$0xff]   ;;  %v49_v59 = vld [vmem:[%s1592_s0 + $0x8] sm:$0x3f]  ;;  %v1309_v5 = vld [vmem:[#allocation2 + $0x170] sm:$0xff]  }
  0x22   :  { %1104 = vmatprep.subr.bf16.mxu0 %v1280_v16  ;;  %v1313_v58 = vld [vmem:[#allocation2 + $0x180] sm:$0xff]   ;;  %v69_v61 = vcombine.high %v49_v59, %v49_v59  ;;  %v76_v62 = vrot.slane %v49_v59, %v58_v34  ;;  %v1307_v63 = vld [vmem:[#allocation2 + $0x168] sm:$0xff]   ;;  %v1310_v6 = vld [vmem:[#allocation2 + $0x130] sm:$0xff]  }
  0x23   :  { %1125 = vmatpush3.bf16.msra.mxu1 %v1279_v15  ;;  %534 = vmatprep.mubr.bf16.mxu0 %v93_v46  ;;  %v95_v51 = vpack.c.bf16 %v68_v47, %v68_v47  ;;  %v1306_v60 = vld [vmem:[#allocation2 + $0x120] sm:$0xff]   ;;  %v1308_v2 = vld [vmem:[#allocation2 + $0x128] sm:$0xff]   ;;  %v1311_v7 = vld [vmem:[#allocation2 + $0x178] sm:$0xff]  }
  0x24   :  { %1126 = vmatprep.subr.bf16.mxu1 %v1282_v18  ;;  %v83_v0 = vrot.slane %v69_v61, %v58_v34  ;;  %v84_v1 = vcombine.high %v76_v62, %v76_v62  ;;  %v1312_v8 = vld [vmem:[#allocation2 + $0x138] sm:$0xff]   ;;  %v96_v9 = vpack.c.bf16 %v76_v62, %v76_v62  ;;  %v1315_v10 = vld [vmem:[%s1595_s3] sm:$0xff]   ;;  %v1316_v11 = vld [vmem:[%s1595_s3 + $0x8] sm:$0xff]  }
  0x25   :  { %1105 = vmatpush3.bf16.msra.mxu0 %v1281_v17  ;;  %574 = vmatprep.mubr.bf16.mxu1 %v95_v51  ;;  %v1317_v12 = vld [vmem:[%s1595_s3 + $0x10] sm:$0xff]   ;;  %v1318_v13 = vld [vmem:[%s1595_s3 + $0x18] sm:$0xff]   ;;  %v1319_v14 = vld [vmem:[%s1595_s3 + $0x20] sm:$0xff]  }
  0x26   :  { %1106 = vmatprep.subr.bf16.mxu0 %v1284_v20  ;;  %v97_v3 = vpack.c.bf16 %v84_v1, %v84_v1  ;;  %v98_v4 = vpack.c.bf16 %v83_v0, %v83_v0  ;;  %v1320_v15 = vld [vmem:[%s1595_s3 + $0x28] sm:$0xff]   ;;  %v1321_v16 = vld [vmem:[%s1595_s3 + $0x30] sm:$0xff]   ;;  %v1322_v17 = vld [vmem:[%s1595_s3 + $0x38] sm:$0xff]  }
  0x27   :  { %1127 = vmatpush3.bf16.msra.mxu1 %v1283_v19  ;;  %v1323_v18 = vld [vmem:[%s1597_s5] sm:$0xff]   ;;  %v1324_v19 = vld [vmem:[%s1597_s5 + $0x8] sm:$0xff]   ;;  %v1325_v20 = vld [vmem:[%s1597_s5 + $0x10] sm:$0xff]  }
  0x28   :  { %1128 = vmatprep.subr.bf16.mxu1 %v1286_v25  ;;  %v1326_v21 = vld [vmem:[%s1597_s5 + $0x18] sm:$0xff]   ;;  %v1327_v22 = vld [vmem:[%s1597_s5 + $0x20] sm:$0xff]   ;;  %v1328_v23 = vld [vmem:[%s1597_s5 + $0x28] sm:$0xff]  }
  0x29   :  { %1107 = vmatpush3.bf16.msra.mxu0 %v1285_v24  ;;  %v1018_v25 = vld [vmem:[%s1594_s2] ss:$0 sm:$0xff]  ;;  %v1329_v51 = vld [vmem:[%s1597_s5 + $0x30] sm:$0xff]   ;;  %s1009_s2 = sshll.u32 %s1393_s30, 4  ;;  %s1010_s2 = int_to_ptr.vmem [resolvable:$true] %s1009_s2 }
  0x2a   :  { %1108 = vmatprep.subr.bf16.mxu0 %v1288_v27  ;;  %v1069_v59 = vld [vmem:[%s1596_s4] ss:$0 sm:$0xff]  ;;  %p1366_p9 = scmp.lt.s32.totalorder %s1010_s2, %s1010_s2 }
  0x2b   :  { %1129 = vmatpush3.bf16.msra.mxu1 %v1287_v26 }
  0x2c   :  { %1130 = vmatprep.subr.bf16.mxu1 %v1290_v31 }
  0x2d   :  { %1109 = vmatpush3.bf16.msra.mxu0 %v1289_v30 }
  0x2e   :  { %1110 = vmatprep.subr.bf16.mxu0 %v1292_v33 }
  0x2f   :  { %1131 = vmatpush3.bf16.msra.mxu1 %v1291_v32 }
  0x30   :  { %1132 = vmatprep.subr.bf16.mxu1 %v1294_v36 }
  0x31   :  { %1111 = vmatpush3.bf16.msra.mxu0 %v1293_v35 }
  0x32   :  { %1140 = vmatprep.subr.bf16.mxu0 %v1296_v41 }
  0x33   :  { %1133 = vmatpush3.bf16.msra.mxu1 %v1295_v39 }
  0x34   :  { %1191 = vmatprep.subr.bf16.mxu1 %v1391_v45  ;;  %535 = vmatmul.mubr.bf16.vlgmr.msra.gmra.mrb[0].mxu0 %v92_v44 }
  0x35   :  { %1141 = vmatpush3.bf16.msra.mxu0 %v1298_v48  ;;  %614 = vmatprep.mubr.bf16.mxu0 %v97_v3  ;;  %v1337_v3 = vld [vmem:[%s1599_s7 + $0x30] sm:$0xff]  }
  0x36   :  { %575 = vmatmul.mubr.bf16.vlgmr.msra.gmra.mrb[0].mxu1 %v94_v49  ;;  %1142 = vmatprep.subr.bf16.mxu0 %v1299_v50 }
  0x37   :  { %1193 = vmatprep.mubr.msk.bf16.mxu1 %vm1392_vm0, %v1391_v45  ;;  %1192 = vmatpush3.bf16.msra.mxu1 %v1313_v58  ;;  %v1336_v58 = vld [vmem:[%s1599_s7 + $0x28] sm:$0xff]  }
  0x38   :  { %1197 = vmatprep.subr.bf16.mxu1 %v1391_v45 }
  0x39   :  { %1143 = vmatpush3.bf16.msra.mxu0 %v1300_v52  ;;  %v1330_v52 = vld [vmem:[%s1597_s5 + $0x38] sm:$0xff]  }
  0x3a   :  { %1144 = vmatprep.subr.bf16.mxu0 %v1301_v53  ;;  %v1331_v53 = vld [vmem:[%s1599_s7] sm:$0xff]  }
  0x3d   :  { %1145 = vmatpush3.bf16.msra.mxu0 %v1302_v54  ;;  %v1332_v54 = vld [vmem:[%s1599_s7 + $0x8] sm:$0xff]  }
  0x3e   :  { %1146 = vmatprep.subr.bf16.mxu0 %v1303_v55  ;;  %1194 = vmatmul.mubr.msk.bf16.vlgmr.msra.gmra.mrb[4].mxu1 %vm498_vm1, %v98_v4  ;;  %v1333_v55 = vld [vmem:[%s1599_s7 + $0x10] sm:$0xff]   ;;  %v1338_v4 = vld [vmem:[%s1599_s7 + $0x38] sm:$0xff]  }
  0x3f   :  { %1213 = vmatprep.mubr.msk.bf16.mxu1 %vm1392_vm0, %v1391_v45  ;;  %1198 = vmatpush3.bf16.msra.mxu1 %v1315_v10 }
  0x40   :  { %1199 = vmatprep.subr.bf16.mxu1 %v1391_v45 }
  0x41   :  { %1147 = vmatpush3.bf16.msra.mxu0 %v1304_v56  ;;  %v1334_v56 = vld [vmem:[%s1599_s7 + $0x18] sm:$0xff]  }
  0x42   :  { %1148 = vmatprep.subr.bf16.mxu0 %v1305_v57  ;;  %v1335_v57 = vld [vmem:[%s1599_s7 + $0x20] sm:$0xff]  }
  0x43   :  { %1200 = vmatpush3.bf16.msra.mxu1 %v1316_v11 }
  0x44   :  { %1201 = vmatprep.subr.bf16.mxu1 %v1391_v45 }
  0x45   :  { %1149 = vmatpush3.bf16.msra.mxu0 %v1306_v60 }
  0x46   :  { %1150 = vmatprep.subr.bf16.mxu0 %v1307_v63 }
  0x47   :  { %1202 = vmatpush3.bf16.msra.mxu1 %v1317_v12 }
  0x48   :  { %1203 = vmatprep.subr.bf16.mxu1 %v1391_v45 }
  0x49   :  { %1151 = vmatpush3.bf16.msra.mxu0 %v1308_v2 }
  0x4a   :  { %1152 = vmatprep.subr.bf16.mxu0 %v1309_v5  ;;  %v1078_v5 = vld [vmem:[%s1598_s6] ss:$0 sm:$0xff]  ;;  %s1361_s6 = scalar_lea.vmem %s1010_s2, 32 }
  0x4b   :  { %1204 = vmatpush3.bf16.msra.mxu1 %v1318_v13  ;;  %p1362_p8 = scmp.ne.s32.totalorder %s1010_s2, %s1361_s6  ;;  %p1367_p10 = scmp.lt.s32.totalorder %s1361_s6, %s1361_s6 }
  0x4c   :  { %1205 = vmatprep.subr.bf16.mxu1 %v1391_v45 }
  0x4d   :  { %1153 = vmatpush3.bf16.msra.mxu0 %v1310_v6  ;;  %p1368_p11 = por %p1367_p10, %p1366_p9 }
  0x4e   :  { %1154 = vmatprep.subr.bf16.mxu0 %v1311_v7 }
  0x4f   :  { %1206 = vmatpush3.bf16.msra.mxu1 %v1319_v14  ;;  %p1369_p12 = pnand %p1368_p11, %p1362_p8 }
  0x50   :  { %1207 = vmatprep.subr.bf16.mxu1 %v1391_v45 }
  0x51   :  { %1155 = vmatpush3.bf16.msra.mxu0 %v1312_v8 }
  0x52   :  { %1217 = vmatprep.subr.bf16.mxu0 %v1391_v45 }
  0x53   :  { %1208 = vmatpush3.bf16.msra.mxu1 %v1320_v15 }
  0x54   :  { %615 = vmatmul.mubr.bf16.vlgmr.msra.gmra.mrb[4].mxu0 %v96_v9  ;;  %1209 = vmatprep.subr.bf16.mxu1 %v1391_v45 }
  0x55   :  { %1233 = vmatprep.mubr.msk.bf16.mxu0 %vm1392_vm0, %v1391_v45  ;;  %1218 = vmatpush3.bf16.msra.mxu0 %v1323_v18 }
  0x56   :  { %1219 = vmatprep.subr.bf16.mxu0 %v1391_v45 }
  0x57   :  { %1210 = vmatpush3.bf16.msra.mxu1 %v1321_v16 }
  0x58   :  { %1211 = vmatprep.subr.bf16.mxu1 %v1391_v45 }
  0x59   :  { %1220 = vmatpush3.bf16.msra.mxu0 %v1324_v19 }
  0x5a   :  { %1221 = vmatprep.subr.bf16.mxu0 %v1391_v45 }
  0x5b   :  { %1212 = vmatpush3.bf16.msra.mxu1 %v1322_v17 }
  0x5c   :  { %1237 = vmatprep.subr.bf16.mxu1 %v1391_v45 }
  0x5d   :  { %1222 = vmatpush3.bf16.msra.mxu0 %v1325_v20 }
  0x5e   :  { %1223 = vmatprep.subr.bf16.mxu0 %v1391_v45 }
  0x61   :  { %1224 = vmatpush3.bf16.msra.mxu0 %v1326_v21 }
  0x62   :  { %1225 = vmatprep.subr.bf16.mxu0 %v1391_v45 }
  0x65   :  { %1226 = vmatpush3.bf16.msra.mxu0 %v1327_v22 }
  0x66   :  { %1227 = vmatprep.subr.bf16.mxu0 %v1391_v45 }
  0x69   :  { %1228 = vmatpush3.bf16.msra.mxu0 %v1328_v23 }
  0x6a   :  { %1229 = vmatprep.subr.bf16.mxu0 %v1391_v45 }
  0x6d   :  { %1230 = vmatpush3.bf16.msra.mxu0 %v1329_v51 }
  0x6e   :  { %1231 = vmatprep.subr.bf16.mxu0 %v1391_v45 }
  0x71   :  { %1232 = vmatpush3.bf16.msra.mxu0 %v1330_v52 }
 0x107   :  { %v1112_v24 = vpop.f32.mrb[0].mxu0 }
 0x108   :  { %v1113_v26 = vpop.f32.mrb[1].mxu0 }
 0x109   :  { %v1114_v27 = vadd.f32 %v1113_v26, %v1112_v24  ;;  %v1115_v28 = vpop.f32.mrb[2].mxu0  ;;  %v1134_v29 = vpop.f32.mrb[0].mxu1 }
 0x10a   :  { %v1116_v30 = vpop.f32.mrb[3].mxu0  ;;  %v1135_v31 = vpop.f32.mrb[1].mxu1 }
 0x10b   :  { %v537_v32 = vadd.f32 %v1114_v27, %v1018_v25  ;;  %v1136_v33 = vadd.f32 %v1135_v31, %v1134_v29  ;;  %v1137_v34 = vpop.f32.mrb[2].mxu1 }
 0x10c   :  { %v1138_v35 = vpop.f32.mrb[3].mxu1 }
 0x10d   :  { %v577_v36 = vadd.f32 %v1136_v33, %v537_v32 }
 0x111   :  { %v656_v37 = vpop.f32.mrb[4].mxu1 }
 0x112   :  { %v1195_v38 = vpop.f32.mrb[5].mxu1 }
 0x113   :  { %v659_v39 = vpop.f32.mrb[6].mxu1 }
 0x114   :  { %v1196_v40 = vpop.f32.mrb[7].mxu1 }
 0x127   :  { %v1156_v41 = vpop.f32.mrb[4].mxu0 }
 0x128   :  { %v1157_v42 = vpop.f32.mrb[5].mxu0 }
 0x129   :  { %v1158_v43 = vadd.f32 %v1157_v42, %v1156_v41  ;;  %v1159_v44 = vpop.f32.mrb[6].mxu0 }
 0x12a   :  { %v1160_v46 = vpop.f32.mrb[7].mxu0 }
 0x12b   :  { %v617_v47 = vadd.f32 %v1158_v43, %v577_v36 }
 0x12d   :  { %v657_v48 = vadd.f32 %v656_v37, %v617_v47 }
 0x12f   :  { %v662_v49 = vmax.f32 %v657_v48, 0.0 }
 0x131   :  { %v663_v50 = vpack.c.bf16 %v662_v49, %v662_v49 }
 0x133   :  { %1214 = vmatmul.mubr.bf16.vlgmr.msra.gmra.mrb[8].mxu1 %v663_v50 }
 0x134   :  { %1253 = vmatprep.mubr.msk.bf16.mxu1 %vm1392_vm0, %v1391_v45  ;;  %1238 = vmatpush3.bf16.msra.mxu1 %v1331_v53 }
 0x135   :  { %1239 = vmatprep.subr.bf16.mxu1 %v1391_v45 }
 0x138   :  { %1240 = vmatpush3.bf16.msra.mxu1 %v1332_v54 }
 0x139   :  { %1241 = vmatprep.subr.bf16.mxu1 %v1391_v45 }
 0x13c   :  { %1242 = vmatpush3.bf16.msra.mxu1 %v1333_v55 }
 0x13d   :  { %1243 = vmatprep.subr.bf16.mxu1 %v1391_v45 }
 0x140   :  { %1244 = vmatpush3.bf16.msra.mxu1 %v1334_v56 }
 0x141   :  { %1245 = vmatprep.subr.bf16.mxu1 %v1391_v45 }
 0x144   :  { %1246 = vmatpush3.bf16.msra.mxu1 %v1335_v57 }
 0x145   :  { %1247 = vmatprep.subr.bf16.mxu1 %v1391_v45 }
 0x148   :  { %1248 = vmatpush3.bf16.msra.mxu1 %v1336_v58 }
 0x149   :  { %1249 = vmatprep.subr.bf16.mxu1 %v1391_v45 }
 0x14c   :  { %1250 = vmatpush3.bf16.msra.mxu1 %v1337_v3 }
 0x14d   :  { %1251 = vmatprep.subr.bf16.mxu1 %v1391_v45  ;;  %v1087_v45 = vld [vmem:[%s1600_s8] ss:$0 sm:$0xff] }
 0x150   :  { %1252 = vmatpush3.bf16.msra.mxu1 %v1338_v4 }
 0x206   :  { %v769_v60 = vpop.f32.mrb[8].mxu1 }
 0x207   :  { %v770_v61 = vadd.f32 %v1069_v59, %v769_v60  ;;  %v1215_v62 = vpop.f32.mrb[9].mxu1 }
 0x208   :  { %v772_v63 = vpop.f32.mrb[10].mxu1 }
 0x209   :  { %v775_v0 = vmax.f32 %v770_v61, 0.0  ;;  %v1216_v1 = vpop.f32.mrb[11].mxu1 }
 0x20b   :  { %v776_v2 = vpack.c.bf16 %v775_v0, %v775_v0 }
 0x20d   :  { %1234 = vmatmul.mubr.bf16.vlgmr.msra.gmra.mrb[8].mxu0 %v776_v2 }
 0x2e0   :  { %v882_v6 = vpop.f32.mrb[8].mxu0 }
 0x2e1   :  { %v883_v7 = vadd.f32 %v1078_v5, %v882_v6  ;;  %v1235_v8 = vpop.f32.mrb[9].mxu0 }
 0x2e2   :  { %v885_v9 = vpop.f32.mrb[10].mxu0 }
 0x2e3   :  { %v888_v10 = vmax.f32 %v883_v7, 0.0  ;;  %v1236_v11 = vpop.f32.mrb[11].mxu0 }
 0x2e5   :  { %v889_v12 = vpack.c.bf16 %v888_v10, %v888_v10 }
 0x2e7   :  { %1254 = vmatmul.mubr.bf16.vlgmr.msra.gmra.mrb[12].mxu1 %v889_v12 }
 0x3ba   :  { %v995_v13 = vpop.f32.mrb[12].mxu1 }
 0x3bb   :  { %v996_v14 = vadd.f32 %v1087_v45, %v995_v13  ;;  %v1255_v15 = vpop.f32.mrb[13].mxu1 }
 0x3bc   :  { %v998_v16 = vpop.f32.mrb[14].mxu1 }
 0x3bd   :  { %v1256_v17 = vpop.f32.mrb[15].mxu1  ;;  %1002 = vst.msk [vmem:[#allocation5] sm:$0x3] %vm1001_vm2, %v996_v14 }
 0x3be   :  { %1372 = shalt.err (!%p1369_p12)
}
 0x3bf   :  { %s1373_s8 = scalar_lea.hbm %s1601_s9, 32 }
 0x3c0   :  { %p1374_p13 = scmp.ne.s32.totalorder %s1601_s9, %s1373_s8  ;;  %p1377_p0 = scmp.lt.u32.totalorder %s1373_s8, %s1601_s9 }
 0x3c2   :  { %p1379_p1 = pnand %p1377_p0, %p1374_p13 }
 0x3c4   :  { %1382 = shalt.err (!%p1379_p1)
}
 0x3c5   :  { %1012 = dma.vmem_to_hbm [thread:$0]  %s1010_s2, 32, %s1601_s9, [#allocation4]  }
 0x3c6   :  { %1385 = dma.done.wait [#allocation4], 32  }
 0x3c7   :  { %1386 = vsyncadd [#allocation4], 4294967264 }
 0x3c8   :  { %1016 = vsyncpa [#allocation3], 1 }
 0x3c9   :  { %1017 = vsyncpa [#allocation4], 1 }

</bundles_post_ra>
